<compile_context>
chip_gen: v5e
topology: v5e:2x2
jax: 0.10.0
libtpu: 0.0.40
codegen_flags: <defaults>
</compile_context>

<pallas_src>
import math

import jax
import jax.numpy as jnp
from jax.experimental import pallas as pl
from jax.experimental.pallas import tpu as pltpu

# GST PCM optical constants from the module.
N_AMORPHOUS_IMAG = 0.3
N_CRYSTALLINE_IMAG = 0.9
WAVELENGTH = 1.55e-6
THICKNESS = 1e-7
# (n_amorphous_real / n_crystalline_real only feed the unused phase_shift.)

TARGET_TILE_BYTES = 4 * 1024 * 1024   # ~4 MiB per-direction tile per grid step
MIN_TILE_BYTES = 512 * 1024           # per-step floor to amortize ~0.35 us overhead
SMALL_FAST_PATH_ELEMS = 65536         # below this, pallas_call is pure launch overhead


def _pcm_modulate_kernel(t_ref, x_ref, o_ref):
    # t_ref : SMEM (1,) f32 -- precomputed transmission scalar (hoisted).
    # x_ref / o_ref : VMEM (block_rows, lane_width) in the caller's dtype.
    t = t_ref[0]
    o_ref[...] = (x_ref[...].astype(jnp.float32) * t).astype(o_ref.dtype)


def _transmission(pcm_state: jax.Array) -> jax.Array:
    """Scalar transmission factor, computed once in f32."""
    state = jnp.clip(pcm_state.astype(jnp.float32), 0.0, 1.0)
    n_imag = (1.0 - state) * N_AMORPHOUS_IMAG + state * N_CRYSTALLINE_IMAG
    return jnp.exp(-4.0 * math.pi * n_imag / WAVELENGTH * THICKNESS)


def _round_up(x: int, m: int) -> int:
    return ((x + m - 1) // m) * m


def phase_change_cell_forward(optical_signal: jax.Array, pcm_state: jax.Array,
                              *, donate: bool = False) -> jax.Array:
    """Apply PCM modulation: optical_signal * exp(-4*pi*n_imag/lambda * d).

    optical_signal : [batch, n_wavelengths] (dtype preserved, f32 or bf16)
    pcm_state      : [1] (the nn.Parameter of the module)
    donate         : if True, alias the signal buffer into the output
                     (input_output_aliases) for donated graphs.
    """
    orig_shape = optical_signal.shape
    dtype = optical_signal.dtype           # keep caller dtype (bf16 halves HBM traffic)
    itemsize = jnp.dtype(dtype).itemsize
    n = optical_signal.size

    transmission = _transmission(pcm_state).reshape((1,)).astype(jnp.float32)

    # Small-size fast path: for tiny tensors (incl. the module's 2x8 case) a plain
    # XLA multiply is strictly cheaper than a pallas_call launch + reshapes.
    if n < SMALL_FAST_PATH_ELEMS:
        out = optical_signal.astype(jnp.float32) * transmission[0]
        return out.astype(dtype).reshape(orig_shape)

    # Lane width: largest multiple of 128 that divides n -> unmasked full-lane
    # stores with NO padding.  Only if n is not a multiple of 128 do we pad the
    # tail (< 128 elements) and slice it off afterwards.
    lane_width = None
    for lw in (512, 256, 128):
        if n % lw == 0:
            lane_width = lw
            break
    flat = optical_signal.reshape(-1)
    if lane_width is None:
        lane_width = 128
        rows = pl.cdiv(n, lane_width)
        flat = jnp.pad(flat, (0, rows * lane_width - n))   # tail only, < 128 elems
        tail_padded = True
    else:
        rows = n // lane_width
        tail_padded = False
    x2d = flat.reshape(rows, lane_width)

    # Block-row selection (multiples of 8, or full extent):
    #  * cap at ~4 MiB per tile (dtype-independent byte target),
    #  * split medium inputs into 2 balanced steps so both v7x TCs get work,
    #  * never split below a ~512 KiB/step floor (step overhead would dominate).
    max_block_rows = max(8, (TARGET_TILE_BYTES // (lane_width * itemsize)) // 8 * 8)
    min_block_rows = max(8, (MIN_TILE_BYTES // (lane_width * itemsize)) // 8 * 8)
    if rows <= max_block_rows:
        if rows >= 2 * min_block_rows:
            block_rows = _round_up(pl.cdiv(rows, 2), 8)    # 2 balanced steps
        else:
            block_rows = rows                              # single full-extent block
    else:
        num_steps = pl.cdiv(rows, max_block_rows)
        if num_steps % 2:                                  # even step count -> balanced
            num_steps += 1
        block_rows = _round_up(pl.cdiv(rows, num_steps), 8)
    grid = (pl.cdiv(rows, block_rows),)                    # partial last block is fine

    out2d = pl.pallas_call(
        _pcm_modulate_kernel,
        out_shape=jax.ShapeDtypeStruct((rows, lane_width), dtype),
        grid=grid,
        in_specs=[
            pl.BlockSpec(memory_space=pltpu.MemorySpace.SMEM),           # transmission
            pl.BlockSpec((block_rows, lane_width), lambda i: (i, 0)),    # signal tile
        ],
        out_specs=pl.BlockSpec((block_rows, lane_width), lambda i: (i, 0)),
        compiler_params=pltpu.CompilerParams(
            dimension_semantics=("parallel",),      # shard rows across TCs on v7x
            vmem_limit_bytes=32 * 1024 * 1024,      # safe on v5e/v6e/v7x
        ),
        cost_estimate=pl.CostEstimate(
            flops=rows * lane_width,
            transcendentals=0,
            bytes_accessed=2 * rows * lane_width * itemsize,
        ),
        input_output_aliases=({1: 0} if donate else {}),
    )(transmission, x2d)

    if tail_padded:
        return out2d.reshape(-1)[:n].reshape(orig_shape)
    return out2d.reshape(orig_shape)


def phase_change_cell_reference(optical_signal, pcm_state):
    """Pure-JAX reference of the PyTorch forward."""
    return optical_signal * _transmission(pcm_state)


if __name__ == "__main__":
    key = jax.random.PRNGKey(0)
    k1, k2, k3, k4 = jax.random.split(key, 4)
    pcm_state = jnp.array([0.5], dtype=jnp.float32)

    # 1) Small shape matching the module's [batch, n_wavelengths] layout (fast path).
    batch, n_wavelengths = 2, 8
    x_small = jax.random.normal(k1, (batch, n_wavelengths), dtype=jnp.float32)
    out = jax.block_until_ready(phase_change_cell_forward(x_small, pcm_state))
    ref = phase_change_cell_reference(x_small, pcm_state)
    assert out.shape == (batch, n_wavelengths) and out.dtype == x_small.dtype
    assert jnp.allclose(out, ref, rtol=1e-6, atol=1e-6), "small-path mismatch"

    # 2) Medium f32: lane_width=256, 2 balanced grid steps, partial last block, no padding.
    x_med = jax.random.normal(k2, (2500, 192), dtype=jnp.float32)
    out_med = jax.block_until_ready(phase_change_cell_forward(x_med, pcm_state))
    ref_med = phase_change_cell_reference(x_med, pcm_state)
    assert out_med.shape == x_med.shape and out_med.dtype == x_med.dtype
    assert jnp.allclose(out_med, ref_med, rtol=1e-5, atol=1e-5), "f32 tiled mismatch"

    # 3) bf16: divisible shape (lane_width=512, single full-extent block), reduced HBM traffic.
    x_bf16 = jax.random.normal(k3, (1536, 256), dtype=jnp.bfloat16)
    out_bf = jax.block_until_ready(phase_change_cell_forward(x_bf16, pcm_state))
    ref_bf = phase_change_cell_reference(x_bf16.astype(jnp.float32), pcm_state)
    assert out_bf.shape == x_bf16.shape and out_bf.dtype == jnp.bfloat16
    assert jnp.allclose(out_bf.astype(jnp.float32), ref_bf, rtol=2e-2, atol=2e-2), \
        "bf16 path mismatch"

    # 4) Non-128-divisible size: exercises the (rare) sub-lane tail-pad path.
    x_odd = jax.random.normal(k4, (259, 257), dtype=jnp.float32)
    out_odd = jax.block_until_ready(phase_change_cell_forward(x_odd, pcm_state))
    ref_odd = phase_change_cell_reference(x_odd, pcm_state)
    assert out_odd.shape == x_odd.shape and out_odd.dtype == x_odd.dtype
    assert jnp.allclose(out_odd, ref_odd, rtol=1e-5, atol=1e-5), "tail-pad path mismatch"

    print("KERNEL_OK")
</pallas_src>

<mosaic_0001>
module attributes {stable_mosaic.version = 11 : i64} {
  func.func @_pcm_modulate_kernel(%arg0: i32, %arg1: memref<1xf32, #tpu.memory_space<smem>>, %arg2: memref<944x256xf32, #tpu.memory_space<vmem>>, %arg3: memref<944x256xf32, #tpu.memory_space<vmem>>) attributes {dimension_semantics = [#tpu.dimension_semantics<parallel>], iteration_bounds = array<i64: 2>, scalar_prefetch = 0 : i64, scratch_operands = 0 : i64, tpu.core_type = #tpu.core_type<tc>, window_params = [{transform_indices = @transform_0, window_bounds = array<i64: 1>}, {transform_indices = @transform_1, window_bounds = array<i64: 944, 256>}, {transform_indices = @transform_2, window_bounds = array<i64: 944, 256>}]} {
    %c0 = arith.constant 0 : index
    %0 = memref.load %arg1[%c0] : memref<1xf32, #tpu.memory_space<smem>>
    %c0_0 = arith.constant 0 : index
    %c0_1 = arith.constant 0 : index
    %1 = vector.load %arg2[%c0_0, %c0_1] : memref<944x256xf32, #tpu.memory_space<vmem>>, vector<944x256xf32>
    %2 = vector.broadcast %0 : f32 to vector<944x256xf32>
    %3 = arith.mulf %1, %2 : vector<944x256xf32>
    %c0_2 = arith.constant 0 : index
    %c0_3 = arith.constant 0 : index
    %4 = vector.load %arg3[%c0_2, %c0_3] : memref<944x256xf32, #tpu.memory_space<vmem>>, vector<944x256xf32>
    tpu.vector_store %arg3[%c0_2, %c0_3], %3 {strides = array<i32>} : memref<944x256xf32, #tpu.memory_space<vmem>>, vector<944x256xf32>,
    return
  }
  func.func @transform_0(%arg0: i32) -> i32 {
    %c0_i32 = arith.constant 0 : i32
    %c0_i32_0 = arith.constant 0 : i32
    return %c0_i32 : i32
  }
  func.func @transform_1(%arg0: i32) -> (i32, i32) {
    %c0_i32 = arith.constant 0 : i32
    %c0_i32_0 = arith.constant 0 : i32
    return %arg0, %c0_i32 : i32, i32
  }
  func.func @transform_2(%arg0: i32) -> (i32, i32) {
    %c0_i32 = arith.constant 0 : i32
    %c0_i32_0 = arith.constant 0 : i32
    return %arg0, %c0_i32 : i32, i32
  }
}

</mosaic_0001>

<bundles_post_ra>
// kernel: tpu_custom_call.1
= control target key start
LH: loop header
LB: loop body
LE: loop exit
PB: predicated region body
PF: predicated region fallthrough
CT: control target
= control target key end

     0   :  { %s2097_s0 = inlined_call_operand.<no memory space> [shape: f32[1], index: 0, kind: input, shape index: {}]   ;;  %s2098_s1 = inlined_call_operand.hbm [shape: f32[1875,256], index: 1, kind: input, shape index: {}]   ;;  %s2099_s2 = inlined_call_operand.hbm [shape: f32[1875,256], index: 2, kind: output, shape index: {}]  }
   0x1   :  { %7 = sst [smem:[#allocation2]] %s2097_s0 }
   0x2   :  { %8 = vsyncpa [#allocation4], 0 }
   0x3   :  { %10 = vsyncpa [#allocation4 + $0x1], 0 }
   0x4   :  { %11 = vsyncpa [#allocation5], 0 }
   0x5   :  { %13 = vsyncpa [#allocation5 + $0x1], 0  ;;  %s1209_s11 = smov 0   ;;  %s1211_s12 = smov 0  }
   0x6   :  { %s1213_s13 = smov 0   ;;  %s1215_s14 = smov 0  }
   0x7 LB: > { %s1230_s0 = sadd.s32 4294967295, %s1183_s14   ;;  %s994_s15 = sadd.s32 4294967294, %s1183_s14   ;;  %s1183_s14 = sphi %s1215_s14, %s2110_s14   ;;  %s1179_s13 = sphi %s1213_s13, %s2109_s13   ;;  %s1175_s12 = sphi %s1211_s12, %s2108_s12   ;;  %s1171_s11 = sphi %s1209_s11, %s2107_s11  }
   0x8   : > { %s1234_s16 = sadd.s32 1, %s1183_s14   ;;  %s47_s17 = sadd.s32 1, %s1179_s13 }
   0x9   : > { %s44_s18 = ssub.s32 %s1183_s14, %s1234_s16  ;;  %p54_p0 = scmp.ne.s32.totalorder %s1179_s13, %s1175_s12 }
   0xa   : > { %p45_p1 = scmp.eq.s32.totalorder %s44_s18, 0  ;;  %p55_p2 = scmp.eq.s32.totalorder %s1183_s14, 0 }
   0xb   : > { %p60_p3 = scmp.ne.s32.totalorder %s1175_s12, %s1171_s11  ;;  %p61_p4 = scmp.eq.s32.totalorder %s1230_s0, 0 }
   0xc   : > { %s1246_s19 = scalar_select %p45_p1, %s1179_s13, %s47_s17  }
   0xd   : > { %p56_p5 = por %p55_p2, %p54_p0  ;;  %p1248_p6 = por %p61_p4, %p60_p3 }
   0xe   : > { %p84_p7 = scmp.eq.s32.totalorder %s1230_s0, 1  ;;  %p90_p8 = scmp.eq.s32.totalorder %s994_s15, 1 }
   0xf   : > { %p2100_p11 = scmp.ge.s32.totalorder %s1183_s14, 2 }
  0x10   : > { %p1253_p9 = por %p84_p7, %p54_p0  ;;  %p1257_p10 = por %p90_p8, %p60_p3 }
  0x11   : > { %109 = sbr.rel (%p2100_p11) target bundleno = 60 (0x3c), region = 20 }
  0x16   : > { %112 = sbr.rel (!%p56_p5) target bundleno = 60 (0x3c), region = 24  ;;  %s113_s23 = sand.u32 (%p56_p5), 1, %s1179_s13  }
  0x17   : > { %s118_s24 = smul.u32 (%p56_p5), 118, %s1183_s14  ;;  %s1269_s30 = scalar_lea.sflag (%p56_p5), [#allocation4], %s113_s23 }
  0x18   : > { %s1022_s25 = smul.u32 (%p56_p5), 1888, %s113_s23 }
  0x19   : > { %s119_s26 = ssub.s32 (%p56_p5), 235, %s118_s24 }
  0x1a   : > { %p120_p12 = scmp.lt.s32.totalorder (%p56_p5), %s119_s26, 118  ;;  %s117_s3 = scalar_lea.vmem (%p56_p5), [#allocation3], %s1022_s25 }
  0x1c   : > { %s2112_s26 = smov (!%p120_p12, %s119_s26), 118 }
  0x1d   : > { %s1014_s27 = sshll.u32 %s2112_s26, 4 }
  0x1e   : > { %s124_s28 = ssub.s32 1888, %s1014_s27 }
  0x1f   : > { %s125_s29 = sshll.u32 %s124_s28, 4 }
  0x20   : > { %126 = vsyncadd %s1269_s30, %s125_s29  ;;  %p1272_p13 = scmp.ne.s32.totalorder %s1014_s27, 0  ;;  %s1020_s5 = smul.u32 1888, %s1183_s14 }
  0x21   : > { %s1277_s6 = sshll.u32 %s117_s3, 4  ;;  %s1003_s7 = sshll.u32 %s2112_s26, 8  ;;  %s135_s6 = int_to_ptr.vmem [resolvable:$true] %s1277_s6 }
  0x22   : > { %s130_s10 = scalar_lea.hbm %s2098_s1, %s1020_s5  ;;  %s1069_s18 = sshrl.u32 %s1003_s7, 4 }
  0x23   : > { %s132_s15 = sshll.u32 %s130_s10, 4  ;;  %s1078_s27 = scalar_lea.hbm %s2098_s1, 3760  ;;  %s1284_s15 = int_to_ptr.hbm [resolvable:$true] %s132_s15 }
  0x24   : > { %s1067_s17 = sshra.s32 %s1284_s15, 4  ;;  %s1068_s17 = int_to_ptr.hbm [resolvable:$true] %s1067_s17 }
  0x25   : > { %s1074_s23 = scalar_lea.hbm %s1068_s17, %s1069_s18  ;;  %p1079_p3 = scmp.lt.s32.totalorder %s1068_s17, %s2098_s1 }
  0x26   : > { %p1075_p0 = scmp.ne.s32.totalorder %s1068_s17, %s1074_s23  ;;  %p1080_p4 = scmp.lt.s32.totalorder %s1078_s27, %s1074_s23 }
  0x28   : > { %p1076_p1 = pnand %p1075_p0, %p1272_p13  ;;  %p1081_p5 = por %p1080_p4, %p1079_p3 }
  0x2a   : > { %p1077_p2 = pneg %p1076_p1 }
  0x2c   : > { %p1082_p7 = pnand %p1081_p5, %p1077_p2 }
  0x2e   : > { %1085 = shalt.err (!%p1082_p7)
}
  0x2f   : > { %s1086_s3 = sshra.s32 %s135_s6, 4  ;;  %s1185_s8 = smov [#allocation3]   ;;  %s1087_s3 = int_to_ptr.vmem [resolvable:$true] %s1086_s3 }
  0x30   : > { %s1093_s5 = scalar_lea.vmem %s1087_s3, %s1069_s18  ;;  %s1097_s9 = scalar_lea.vmem %s1185_s8, 3776 }
  0x31   : > { %p1094_p8 = scmp.ne.s32.totalorder %s1087_s3, %s1093_s5  ;;  %p1099_p1 = scmp.lt.s32.totalorder %s1097_s9, %s1093_s5 }
  0x33   : > { %p1095_p12 = pnand %p1094_p8, %p1272_p13 }
  0x35   : > { %p1096_p0 = pneg %p1095_p12 }
  0x37   : > { %p1101_p11 = pnand %p1099_p1, %p1096_p0 }
  0x39   : > { %1104 = shalt.err (!%p1101_p11)
}
  0x3a   : > { %s1186_s10 = smov 256   ;;  %s1187_s17 = smov 16  }
  0x3b   : > { %140 = dma.hbm_to_vmem [thread:$0]  (%p1272_p13), %s1284_s15, %s1003_s7, %s135_s6, %s1269_s30, %s1186_s10, %s1186_s10, %s1187_s17  }
  0x3c PF: > { %p1004_p2 = scmp.ge.s32.totalorder %s1183_s14, 1  ;;  %p142_p3 = scmp.lt.s32.totalorder %s1183_s14, 3 }
  0x3e   : > { %p143_p4 = pnand %p1004_p2, %p142_p3 }
  0x3f   : > { %s1312_s18 = sand.u32 (!%p143_p4), 1, %s1175_s12  }
  0x40   : > { %146 = sbr.rel (%p143_p4) target bundleno = 346 (0x15a), region = 28  ;;  %s149_s24 = scalar_lea.sflag (!%p143_p4), [#allocation4], %s1312_s18 }
  0x41   : > { %s1023_s23 = smul.u32 (!%p143_p4), 1888, %s1312_s18 }
  0x43   : > { %s1316_s4 = scalar_lea.vmem (!%p143_p4), [#allocation3], %s1023_s23 }
  0x45   : > { %1162 = dma.done.wait (%p1248_p6), %s149_s24, 30208  }
  0x46   : > { %1164 = vsyncadd (%p1248_p6), %s149_s24, 4294937088  ;;  %s186_s26 = sld [smem:[#allocation2]]  ;;  %v187_v0 = vld [vmem:[%s1316_s4] sm:$0xff]  ;;  %v188_v2 = vld [vmem:[%s1316_s4 + $0x8] sm:$0xff]  ;;  %s1335_s20 = scalar_lea.vmem [#allocation6], %s1023_s23 }
  0x47   : > { %v189_v3 = vld [vmem:[%s1316_s4 + $0x10] sm:$0xff]  ;;  %v190_v7 = vld [vmem:[%s1316_s4 + $0x18] sm:$0xff]  ;;  %v191_v8 = vld [vmem:[%s1316_s4 + $0x20] sm:$0xff]  ;;  %s897_s30 = scalar_lea.sflag [#allocation5], %s1312_s18  ;;  %s904_s6 = smul.u32 (%p1253_p9), 118, %s1230_s0 }
  0x48   : > { %v192_v9 = vld [vmem:[%s1316_s4 + $0x28] sm:$0xff]  ;;  %v193_v11 = vld [vmem:[%s1316_s4 + $0x30] sm:$0xff]  ;;  %v194_v13 = vld [vmem:[%s1316_s4 + $0x38] sm:$0xff] }
  0x49   : > { %v195_v15 = vld [vmem:[%s1316_s4 + $0x40] sm:$0xff]  ;;  %v196_v17 = vld [vmem:[%s1316_s4 + $0x48] sm:$0xff]  ;;  %v197_v19 = vld [vmem:[%s1316_s4 + $0x50] sm:$0xff]  ;;  %s905_s7 = ssub.s32 (%p1253_p9), 235, %s904_s6 }
  0x4a   : > { %v198_v21 = vld [vmem:[%s1316_s4 + $0x58] sm:$0xff]  ;;  %v199_v23 = vld [vmem:[%s1316_s4 + $0x60] sm:$0xff]  ;;  %v200_v25 = vld [vmem:[%s1316_s4 + $0x68] sm:$0xff]  ;;  %p906_p6 = scmp.lt.s32.totalorder (%p1253_p9), %s905_s7, 118 }
  0x4b   : > { %v201_v27 = vld [vmem:[%s1316_s4 + $0x70] sm:$0xff]  ;;  %v202_v29 = vld [vmem:[%s1316_s4 + $0x78] sm:$0xff]  ;;  %v203_v31 = vld [vmem:[%s1316_s4 + $0x80] sm:$0xff] }
  0x4c   : > { %v1323_v1 = vstv %s186_s26  ;;  %v204_v33 = vld [vmem:[%s1316_s4 + $0x88] sm:$0xff]  ;;  %v205_v35 = vld [vmem:[%s1316_s4 + $0x90] sm:$0xff]  ;;  %v206_v37 = vld [vmem:[%s1316_s4 + $0x98] sm:$0xff] }
  0x4d   : > { %v424_v4 = vmul.f32 %v1323_v1, %v187_v0  ;;  %v425_v5 = vmul.f32 %v1323_v1, %v188_v2  ;;  %v426_v6 = vmul.f32 %v1323_v1, %v189_v3  ;;  %v427_v10 = vmul.f32 %v1323_v1, %v190_v7  ;;  %v207_v39 = vld [vmem:[%s1316_s4 + $0xa0] sm:$0xff]  ;;  %v208_v41 = vld [vmem:[%s1316_s4 + $0xa8] sm:$0xff]  ;;  %v209_v43 = vld [vmem:[%s1316_s4 + $0xb0] sm:$0xff] }
  0x4e   : > { %v428_v12 = vmul.f32 %v1323_v1, %v191_v8  ;;  %v429_v14 = vmul.f32 %v1323_v1, %v192_v9  ;;  %v430_v16 = vmul.f32 %v1323_v1, %v193_v11  ;;  %v431_v18 = vmul.f32 %v1323_v1, %v194_v13  ;;  %v210_v45 = vld [vmem:[%s1316_s4 + $0xb8] sm:$0xff]  ;;  %v211_v47 = vld [vmem:[%s1316_s4 + $0xc0] sm:$0xff]  ;;  %v212_v49 = vld [vmem:[%s1316_s4 + $0xc8] sm:$0xff] }
  0x4f   : > { %660 = vst [vmem:[%s1335_s20] sm:$0xff] %v424_v4  ;;  %v432_v20 = vmul.f32 %v1323_v1, %v195_v15  ;;  %v433_v22 = vmul.f32 %v1323_v1, %v196_v17  ;;  %v434_v24 = vmul.f32 %v1323_v1, %v197_v19  ;;  %v435_v26 = vmul.f32 %v1323_v1, %v198_v21  ;;  %v213_v51 = vld [vmem:[%s1316_s4 + $0xd0] sm:$0xff]  ;;  %v214_v53 = vld [vmem:[%s1316_s4 + $0xd8] sm:$0xff]  ;;  %v215_v55 = vld [vmem:[%s1316_s4 + $0xe0] sm:$0xff] }
  0x50   : > { %661 = vst [vmem:[%s1335_s20 + $0x8] sm:$0xff] %v425_v5  ;;  %v436_v28 = vmul.f32 %v1323_v1, %v199_v23  ;;  %v437_v30 = vmul.f32 %v1323_v1, %v200_v25  ;;  %v438_v32 = vmul.f32 %v1323_v1, %v201_v27  ;;  %v439_v34 = vmul.f32 %v1323_v1, %v202_v29  ;;  %v216_v57 = vld [vmem:[%s1316_s4 + $0xe8] sm:$0xff]  ;;  %v217_v59 = vld [vmem:[%s1316_s4 + $0xf0] sm:$0xff]  ;;  %v218_v61 = vld [vmem:[%s1316_s4 + $0xf8] sm:$0xff] }
  0x51   : > { %662 = vst [vmem:[%s1335_s20 + $0x10] sm:$0xff] %v426_v6  ;;  %v440_v36 = vmul.f32 %v1323_v1, %v203_v31  ;;  %v441_v38 = vmul.f32 %v1323_v1, %v204_v33  ;;  %v442_v40 = vmul.f32 %v1323_v1, %v205_v35  ;;  %v443_v42 = vmul.f32 %v1323_v1, %v206_v37  ;;  %v219_v63 = vld [vmem:[%s1316_s4 + $0x100] sm:$0xff]  ;;  %v220_v2 = vld [vmem:[%s1316_s4 + $0x108] sm:$0xff]  ;;  %v221_v4 = vld [vmem:[%s1316_s4 + $0x110] sm:$0xff] }
  0x52   : > { %663 = vst [vmem:[%s1335_s20 + $0x18] sm:$0xff] %v427_v10  ;;  %v444_v44 = vmul.f32 %v1323_v1, %v207_v39  ;;  %v445_v46 = vmul.f32 %v1323_v1, %v208_v41  ;;  %v446_v48 = vmul.f32 %v1323_v1, %v209_v43  ;;  %v447_v50 = vmul.f32 %v1323_v1, %v210_v45  ;;  %v222_v6 = vld [vmem:[%s1316_s4 + $0x118] sm:$0xff]  ;;  %v223_v8 = vld [vmem:[%s1316_s4 + $0x120] sm:$0xff]  ;;  %v224_v10 = vld [vmem:[%s1316_s4 + $0x128] sm:$0xff] }
  0x53   : > { %664 = vst [vmem:[%s1335_s20 + $0x20] sm:$0xff] %v428_v12  ;;  %v448_v52 = vmul.f32 %v1323_v1, %v211_v47  ;;  %v449_v54 = vmul.f32 %v1323_v1, %v212_v49  ;;  %v450_v56 = vmul.f32 %v1323_v1, %v213_v51  ;;  %v451_v58 = vmul.f32 %v1323_v1, %v214_v53  ;;  %v225_v12 = vld [vmem:[%s1316_s4 + $0x130] sm:$0xff] }
  0x54   : > { %665 = vst [vmem:[%s1335_s20 + $0x28] sm:$0xff] %v429_v14  ;;  %v452_v60 = vmul.f32 %v1323_v1, %v215_v55  ;;  %v453_v62 = vmul.f32 %v1323_v1, %v216_v57  ;;  %v454_v0 = vmul.f32 %v1323_v1, %v217_v59  ;;  %v455_v3 = vmul.f32 %v1323_v1, %v218_v61  ;;  %v226_v14 = vld [vmem:[%s1316_s4 + $0x138] sm:$0xff] }
  0x55   : > { %666 = vst [vmem:[%s1335_s20 + $0x30] sm:$0xff] %v430_v16  ;;  %v456_v5 = vmul.f32 %v1323_v1, %v219_v63  ;;  %v457_v7 = vmul.f32 %v1323_v1, %v220_v2  ;;  %v458_v9 = vmul.f32 %v1323_v1, %v221_v4  ;;  %v459_v11 = vmul.f32 %v1323_v1, %v222_v6  ;;  %v227_v16 = vld [vmem:[%s1316_s4 + $0x140] sm:$0xff] }
  0x56   : > { %667 = vst [vmem:[%s1335_s20 + $0x38] sm:$0xff] %v431_v18  ;;  %v460_v13 = vmul.f32 %v1323_v1, %v223_v8  ;;  %v461_v15 = vmul.f32 %v1323_v1, %v224_v10  ;;  %v462_v17 = vmul.f32 %v1323_v1, %v225_v12  ;;  %v228_v18 = vld [vmem:[%s1316_s4 + $0x148] sm:$0xff]  ;;  %v463_v19 = vmul.f32 %v1323_v1, %v226_v14 }
  0x57   : > { %668 = vst [vmem:[%s1335_s20 + $0x40] sm:$0xff] %v432_v20  ;;  %v229_v20 = vld [vmem:[%s1316_s4 + $0x150] sm:$0xff]  ;;  %v464_v21 = vmul.f32 %v1323_v1, %v227_v16  ;;  %v465_v23 = vmul.f32 %v1323_v1, %v228_v18 }
  0x58   : > { %669 = vst [vmem:[%s1335_s20 + $0x48] sm:$0xff] %v433_v22  ;;  %v230_v22 = vld [vmem:[%s1316_s4 + $0x158] sm:$0xff]  ;;  %v466_v25 = vmul.f32 %v1323_v1, %v229_v20 }
  0x59   : > { %670 = vst [vmem:[%s1335_s20 + $0x50] sm:$0xff] %v434_v24  ;;  %v231_v24 = vld [vmem:[%s1316_s4 + $0x160] sm:$0xff]  ;;  %v467_v27 = vmul.f32 %v1323_v1, %v230_v22 }
  0x5a   : > { %671 = vst [vmem:[%s1335_s20 + $0x58] sm:$0xff] %v435_v26  ;;  %v232_v26 = vld [vmem:[%s1316_s4 + $0x168] sm:$0xff]  ;;  %v468_v29 = vmul.f32 %v1323_v1, %v231_v24 }
  0x5b   : > { %672 = vst [vmem:[%s1335_s20 + $0x60] sm:$0xff] %v436_v28  ;;  %v233_v28 = vld [vmem:[%s1316_s4 + $0x170] sm:$0xff]  ;;  %v469_v31 = vmul.f32 %v1323_v1, %v232_v26 }
  0x5c   : > { %673 = vst [vmem:[%s1335_s20 + $0x68] sm:$0xff] %v437_v30  ;;  %v234_v30 = vld [vmem:[%s1316_s4 + $0x178] sm:$0xff]  ;;  %v470_v33 = vmul.f32 %v1323_v1, %v233_v28 }
  0x5d   : > { %674 = vst [vmem:[%s1335_s20 + $0x70] sm:$0xff] %v438_v32  ;;  %v235_v32 = vld [vmem:[%s1316_s4 + $0x180] sm:$0xff]  ;;  %v471_v35 = vmul.f32 %v1323_v1, %v234_v30 }
  0x5e   : > { %675 = vst [vmem:[%s1335_s20 + $0x78] sm:$0xff] %v439_v34  ;;  %v236_v34 = vld [vmem:[%s1316_s4 + $0x188] sm:$0xff]  ;;  %v472_v37 = vmul.f32 %v1323_v1, %v235_v32 }
  0x5f   : > { %676 = vst [vmem:[%s1335_s20 + $0x80] sm:$0xff] %v440_v36  ;;  %v237_v36 = vld [vmem:[%s1316_s4 + $0x190] sm:$0xff]  ;;  %v473_v39 = vmul.f32 %v1323_v1, %v236_v34 }
  0x60   : > { %677 = vst [vmem:[%s1335_s20 + $0x88] sm:$0xff] %v441_v38  ;;  %v238_v38 = vld [vmem:[%s1316_s4 + $0x198] sm:$0xff]  ;;  %v474_v41 = vmul.f32 %v1323_v1, %v237_v36 }
  0x61   : > { %678 = vst [vmem:[%s1335_s20 + $0x90] sm:$0xff] %v442_v40  ;;  %v239_v40 = vld [vmem:[%s1316_s4 + $0x1a0] sm:$0xff]  ;;  %v475_v43 = vmul.f32 %v1323_v1, %v238_v38 }
  0x62   : > { %679 = vst [vmem:[%s1335_s20 + $0x98] sm:$0xff] %v443_v42  ;;  %v240_v42 = vld [vmem:[%s1316_s4 + $0x1a8] sm:$0xff]  ;;  %v476_v45 = vmul.f32 %v1323_v1, %v239_v40 }
  0x63   : > { %680 = vst [vmem:[%s1335_s20 + $0xa0] sm:$0xff] %v444_v44  ;;  %v241_v44 = vld [vmem:[%s1316_s4 + $0x1b0] sm:$0xff]  ;;  %v477_v47 = vmul.f32 %v1323_v1, %v240_v42 }
  0x64   : > { %681 = vst [vmem:[%s1335_s20 + $0xa8] sm:$0xff] %v445_v46  ;;  %v242_v46 = vld [vmem:[%s1316_s4 + $0x1b8] sm:$0xff]  ;;  %v478_v49 = vmul.f32 %v1323_v1, %v241_v44 }
  0x65   : > { %682 = vst [vmem:[%s1335_s20 + $0xb0] sm:$0xff] %v446_v48  ;;  %v243_v48 = vld [vmem:[%s1316_s4 + $0x1c0] sm:$0xff]  ;;  %v479_v51 = vmul.f32 %v1323_v1, %v242_v46 }
  0x66   : > { %683 = vst [vmem:[%s1335_s20 + $0xb8] sm:$0xff] %v447_v50  ;;  %v244_v50 = vld [vmem:[%s1316_s4 + $0x1c8] sm:$0xff]  ;;  %v480_v53 = vmul.f32 %v1323_v1, %v243_v48 }
  0x67   : > { %684 = vst [vmem:[%s1335_s20 + $0xc0] sm:$0xff] %v448_v52  ;;  %v245_v52 = vld [vmem:[%s1316_s4 + $0x1d0] sm:$0xff]  ;;  %v481_v55 = vmul.f32 %v1323_v1, %v244_v50 }
  0x68   : > { %685 = vst [vmem:[%s1335_s20 + $0xc8] sm:$0xff] %v449_v54  ;;  %v246_v54 = vld [vmem:[%s1316_s4 + $0x1d8] sm:$0xff]  ;;  %v482_v57 = vmul.f32 %v1323_v1, %v245_v52 }
  0x69   : > { %686 = vst [vmem:[%s1335_s20 + $0xd0] sm:$0xff] %v450_v56  ;;  %v247_v56 = vld [vmem:[%s1316_s4 + $0x1e0] sm:$0xff]  ;;  %v483_v59 = vmul.f32 %v1323_v1, %v246_v54 }
  0x6a   : > { %687 = vst [vmem:[%s1335_s20 + $0xd8] sm:$0xff] %v451_v58  ;;  %v248_v58 = vld [vmem:[%s1316_s4 + $0x1e8] sm:$0xff]  ;;  %v484_v61 = vmul.f32 %v1323_v1, %v247_v56 }
  0x6b   : > { %688 = vst [vmem:[%s1335_s20 + $0xe0] sm:$0xff] %v452_v60  ;;  %v249_v60 = vld [vmem:[%s1316_s4 + $0x1f0] sm:$0xff]  ;;  %v485_v63 = vmul.f32 %v1323_v1, %v248_v58 }
  0x6c   : > { %689 = vst [vmem:[%s1335_s20 + $0xe8] sm:$0xff] %v453_v62  ;;  %v250_v62 = vld [vmem:[%s1316_s4 + $0x1f8] sm:$0xff]  ;;  %v486_v2 = vmul.f32 %v1323_v1, %v249_v60 }
  0x6d   : > { %690 = vst [vmem:[%s1335_s20 + $0xf0] sm:$0xff] %v454_v0  ;;  %v251_v0 = vld [vmem:[%s1316_s4 + $0x200] sm:$0xff]  ;;  %v487_v4 = vmul.f32 %v1323_v1, %v250_v62 }
  0x6e   : > { %691 = vst [vmem:[%s1335_s20 + $0xf8] sm:$0xff] %v455_v3  ;;  %v252_v3 = vld [vmem:[%s1316_s4 + $0x208] sm:$0xff]  ;;  %v488_v6 = vmul.f32 %v1323_v1, %v251_v0 }
  0x6f   : > { %692 = vst [vmem:[%s1335_s20 + $0x100] sm:$0xff] %v456_v5  ;;  %v253_v5 = vld [vmem:[%s1316_s4 + $0x210] sm:$0xff]  ;;  %v489_v8 = vmul.f32 %v1323_v1, %v252_v3 }
  0x70   : > { %693 = vst [vmem:[%s1335_s20 + $0x108] sm:$0xff] %v457_v7  ;;  %v254_v7 = vld [vmem:[%s1316_s4 + $0x218] sm:$0xff]  ;;  %v490_v10 = vmul.f32 %v1323_v1, %v253_v5 }
  0x71   : > { %694 = vst [vmem:[%s1335_s20 + $0x110] sm:$0xff] %v458_v9  ;;  %v255_v9 = vld [vmem:[%s1316_s4 + $0x220] sm:$0xff]  ;;  %v491_v12 = vmul.f32 %v1323_v1, %v254_v7 }
  0x72   : > { %695 = vst [vmem:[%s1335_s20 + $0x118] sm:$0xff] %v459_v11  ;;  %v256_v11 = vld [vmem:[%s1316_s4 + $0x228] sm:$0xff]  ;;  %v492_v14 = vmul.f32 %v1323_v1, %v255_v9 }
  0x73   : > { %696 = vst [vmem:[%s1335_s20 + $0x120] sm:$0xff] %v460_v13  ;;  %v257_v13 = vld [vmem:[%s1316_s4 + $0x230] sm:$0xff]  ;;  %v493_v16 = vmul.f32 %v1323_v1, %v256_v11 }
  0x74   : > { %697 = vst [vmem:[%s1335_s20 + $0x128] sm:$0xff] %v461_v15  ;;  %v258_v15 = vld [vmem:[%s1316_s4 + $0x238] sm:$0xff]  ;;  %v494_v18 = vmul.f32 %v1323_v1, %v257_v13 }
  0x75   : > { %698 = vst [vmem:[%s1335_s20 + $0x130] sm:$0xff] %v462_v17  ;;  %v259_v17 = vld [vmem:[%s1316_s4 + $0x240] sm:$0xff]  ;;  %v495_v20 = vmul.f32 %v1323_v1, %v258_v15 }
  0x76   : > { %699 = vst [vmem:[%s1335_s20 + $0x138] sm:$0xff] %v463_v19  ;;  %v260_v19 = vld [vmem:[%s1316_s4 + $0x248] sm:$0xff]  ;;  %v496_v22 = vmul.f32 %v1323_v1, %v259_v17 }
  0x77   : > { %700 = vst [vmem:[%s1335_s20 + $0x140] sm:$0xff] %v464_v21  ;;  %v261_v21 = vld [vmem:[%s1316_s4 + $0x250] sm:$0xff]  ;;  %v497_v24 = vmul.f32 %v1323_v1, %v260_v19 }
  0x78   : > { %701 = vst [vmem:[%s1335_s20 + $0x148] sm:$0xff] %v465_v23  ;;  %v262_v23 = vld [vmem:[%s1316_s4 + $0x258] sm:$0xff]  ;;  %v498_v26 = vmul.f32 %v1323_v1, %v261_v21 }
  0x79   : > { %702 = vst [vmem:[%s1335_s20 + $0x150] sm:$0xff] %v466_v25  ;;  %v263_v25 = vld [vmem:[%s1316_s4 + $0x260] sm:$0xff]  ;;  %v499_v28 = vmul.f32 %v1323_v1, %v262_v23 }
  0x7a   : > { %703 = vst [vmem:[%s1335_s20 + $0x158] sm:$0xff] %v467_v27  ;;  %v264_v27 = vld [vmem:[%s1316_s4 + $0x268] sm:$0xff]  ;;  %v500_v30 = vmul.f32 %v1323_v1, %v263_v25 }
  0x7b   : > { %704 = vst [vmem:[%s1335_s20 + $0x160] sm:$0xff] %v468_v29  ;;  %v265_v29 = vld [vmem:[%s1316_s4 + $0x270] sm:$0xff]  ;;  %v501_v32 = vmul.f32 %v1323_v1, %v264_v27 }
  0x7c   : > { %705 = vst [vmem:[%s1335_s20 + $0x168] sm:$0xff] %v469_v31  ;;  %v266_v31 = vld [vmem:[%s1316_s4 + $0x278] sm:$0xff]  ;;  %v502_v34 = vmul.f32 %v1323_v1, %v265_v29 }
  0x7d   : > { %706 = vst [vmem:[%s1335_s20 + $0x170] sm:$0xff] %v470_v33  ;;  %v267_v33 = vld [vmem:[%s1316_s4 + $0x280] sm:$0xff]  ;;  %v503_v36 = vmul.f32 %v1323_v1, %v266_v31 }
  0x7e   : > { %707 = vst [vmem:[%s1335_s20 + $0x178] sm:$0xff] %v471_v35  ;;  %v268_v35 = vld [vmem:[%s1316_s4 + $0x288] sm:$0xff]  ;;  %v504_v38 = vmul.f32 %v1323_v1, %v267_v33 }
  0x7f   : > { %708 = vst [vmem:[%s1335_s20 + $0x180] sm:$0xff] %v472_v37  ;;  %v269_v37 = vld [vmem:[%s1316_s4 + $0x290] sm:$0xff]  ;;  %v505_v40 = vmul.f32 %v1323_v1, %v268_v35 }
  0x80   : > { %709 = vst [vmem:[%s1335_s20 + $0x188] sm:$0xff] %v473_v39  ;;  %v270_v39 = vld [vmem:[%s1316_s4 + $0x298] sm:$0xff]  ;;  %v506_v42 = vmul.f32 %v1323_v1, %v269_v37 }
  0x81   : > { %710 = vst [vmem:[%s1335_s20 + $0x190] sm:$0xff] %v474_v41  ;;  %v271_v41 = vld [vmem:[%s1316_s4 + $0x2a0] sm:$0xff]  ;;  %v507_v44 = vmul.f32 %v1323_v1, %v270_v39 }
  0x82   : > { %711 = vst [vmem:[%s1335_s20 + $0x198] sm:$0xff] %v475_v43  ;;  %v272_v43 = vld [vmem:[%s1316_s4 + $0x2a8] sm:$0xff]  ;;  %v508_v46 = vmul.f32 %v1323_v1, %v271_v41 }
  0x83   : > { %712 = vst [vmem:[%s1335_s20 + $0x1a0] sm:$0xff] %v476_v45  ;;  %v273_v45 = vld [vmem:[%s1316_s4 + $0x2b0] sm:$0xff]  ;;  %v509_v48 = vmul.f32 %v1323_v1, %v272_v43 }
  0x84   : > { %713 = vst [vmem:[%s1335_s20 + $0x1a8] sm:$0xff] %v477_v47  ;;  %v274_v47 = vld [vmem:[%s1316_s4 + $0x2b8] sm:$0xff]  ;;  %v510_v50 = vmul.f32 %v1323_v1, %v273_v45 }
  0x85   : > { %714 = vst [vmem:[%s1335_s20 + $0x1b0] sm:$0xff] %v478_v49  ;;  %v275_v49 = vld [vmem:[%s1316_s4 + $0x2c0] sm:$0xff]  ;;  %v511_v52 = vmul.f32 %v1323_v1, %v274_v47 }
  0x86   : > { %715 = vst [vmem:[%s1335_s20 + $0x1b8] sm:$0xff] %v479_v51  ;;  %v276_v51 = vld [vmem:[%s1316_s4 + $0x2c8] sm:$0xff]  ;;  %v512_v54 = vmul.f32 %v1323_v1, %v275_v49 }
  0x87   : > { %716 = vst [vmem:[%s1335_s20 + $0x1c0] sm:$0xff] %v480_v53  ;;  %v277_v53 = vld [vmem:[%s1316_s4 + $0x2d0] sm:$0xff]  ;;  %v513_v56 = vmul.f32 %v1323_v1, %v276_v51 }
  0x88   : > { %717 = vst [vmem:[%s1335_s20 + $0x1c8] sm:$0xff] %v481_v55  ;;  %v278_v55 = vld [vmem:[%s1316_s4 + $0x2d8] sm:$0xff]  ;;  %v514_v58 = vmul.f32 %v1323_v1, %v277_v53 }
  0x89   : > { %718 = vst [vmem:[%s1335_s20 + $0x1d0] sm:$0xff] %v482_v57  ;;  %v279_v57 = vld [vmem:[%s1316_s4 + $0x2e0] sm:$0xff]  ;;  %v515_v60 = vmul.f32 %v1323_v1, %v278_v55 }
  0x8a   : > { %719 = vst [vmem:[%s1335_s20 + $0x1d8] sm:$0xff] %v483_v59  ;;  %v280_v59 = vld [vmem:[%s1316_s4 + $0x2e8] sm:$0xff]  ;;  %v516_v62 = vmul.f32 %v1323_v1, %v279_v57 }
  0x8b   : > { %720 = vst [vmem:[%s1335_s20 + $0x1e0] sm:$0xff] %v484_v61  ;;  %v281_v61 = vld [vmem:[%s1316_s4 + $0x2f0] sm:$0xff]  ;;  %v517_v0 = vmul.f32 %v1323_v1, %v280_v59 }
  0x8c   : > { %721 = vst [vmem:[%s1335_s20 + $0x1e8] sm:$0xff] %v485_v63  ;;  %v282_v63 = vld [vmem:[%s1316_s4 + $0x2f8] sm:$0xff]  ;;  %v518_v3 = vmul.f32 %v1323_v1, %v281_v61 }
  0x8d   : > { %722 = vst [vmem:[%s1335_s20 + $0x1f0] sm:$0xff] %v486_v2  ;;  %v283_v2 = vld [vmem:[%s1316_s4 + $0x300] sm:$0xff]  ;;  %v519_v5 = vmul.f32 %v1323_v1, %v282_v63 }
  0x8e   : > { %723 = vst [vmem:[%s1335_s20 + $0x1f8] sm:$0xff] %v487_v4  ;;  %v284_v4 = vld [vmem:[%s1316_s4 + $0x308] sm:$0xff]  ;;  %v520_v7 = vmul.f32 %v1323_v1, %v283_v2 }
  0x8f   : > { %724 = vst [vmem:[%s1335_s20 + $0x200] sm:$0xff] %v488_v6  ;;  %v285_v6 = vld [vmem:[%s1316_s4 + $0x310] sm:$0xff]  ;;  %v521_v9 = vmul.f32 %v1323_v1, %v284_v4 }
  0x90   : > { %725 = vst [vmem:[%s1335_s20 + $0x208] sm:$0xff] %v489_v8  ;;  %v286_v8 = vld [vmem:[%s1316_s4 + $0x318] sm:$0xff]  ;;  %v522_v11 = vmul.f32 %v1323_v1, %v285_v6 }
  0x91   : > { %726 = vst [vmem:[%s1335_s20 + $0x210] sm:$0xff] %v490_v10  ;;  %v287_v10 = vld [vmem:[%s1316_s4 + $0x320] sm:$0xff]  ;;  %v523_v13 = vmul.f32 %v1323_v1, %v286_v8 }
  0x92   : > { %727 = vst [vmem:[%s1335_s20 + $0x218] sm:$0xff] %v491_v12  ;;  %v288_v12 = vld [vmem:[%s1316_s4 + $0x328] sm:$0xff]  ;;  %v524_v15 = vmul.f32 %v1323_v1, %v287_v10 }
  0x93   : > { %728 = vst [vmem:[%s1335_s20 + $0x220] sm:$0xff] %v492_v14  ;;  %v289_v14 = vld [vmem:[%s1316_s4 + $0x330] sm:$0xff]  ;;  %v525_v17 = vmul.f32 %v1323_v1, %v288_v12 }
  0x94   : > { %729 = vst [vmem:[%s1335_s20 + $0x228] sm:$0xff] %v493_v16  ;;  %v290_v16 = vld [vmem:[%s1316_s4 + $0x338] sm:$0xff]  ;;  %v526_v19 = vmul.f32 %v1323_v1, %v289_v14 }
  0x95   : > { %730 = vst [vmem:[%s1335_s20 + $0x230] sm:$0xff] %v494_v18  ;;  %v291_v18 = vld [vmem:[%s1316_s4 + $0x340] sm:$0xff]  ;;  %v527_v21 = vmul.f32 %v1323_v1, %v290_v16 }
  0x96   : > { %731 = vst [vmem:[%s1335_s20 + $0x238] sm:$0xff] %v495_v20  ;;  %v292_v20 = vld [vmem:[%s1316_s4 + $0x348] sm:$0xff]  ;;  %v528_v23 = vmul.f32 %v1323_v1, %v291_v18 }
  0x97   : > { %732 = vst [vmem:[%s1335_s20 + $0x240] sm:$0xff] %v496_v22  ;;  %v293_v22 = vld [vmem:[%s1316_s4 + $0x350] sm:$0xff]  ;;  %v529_v25 = vmul.f32 %v1323_v1, %v292_v20 }
  0x98   : > { %733 = vst [vmem:[%s1335_s20 + $0x248] sm:$0xff] %v497_v24  ;;  %v294_v24 = vld [vmem:[%s1316_s4 + $0x358] sm:$0xff]  ;;  %v530_v27 = vmul.f32 %v1323_v1, %v293_v22 }
  0x99   : > { %734 = vst [vmem:[%s1335_s20 + $0x250] sm:$0xff] %v498_v26  ;;  %v295_v26 = vld [vmem:[%s1316_s4 + $0x360] sm:$0xff]  ;;  %v531_v29 = vmul.f32 %v1323_v1, %v294_v24 }
  0x9a   : > { %735 = vst [vmem:[%s1335_s20 + $0x258] sm:$0xff] %v499_v28  ;;  %v296_v28 = vld [vmem:[%s1316_s4 + $0x368] sm:$0xff]  ;;  %v532_v31 = vmul.f32 %v1323_v1, %v295_v26 }
  0x9b   : > { %736 = vst [vmem:[%s1335_s20 + $0x260] sm:$0xff] %v500_v30  ;;  %v297_v30 = vld [vmem:[%s1316_s4 + $0x370] sm:$0xff]  ;;  %v533_v33 = vmul.f32 %v1323_v1, %v296_v28 }
  0x9c   : > { %737 = vst [vmem:[%s1335_s20 + $0x268] sm:$0xff] %v501_v32  ;;  %v298_v32 = vld [vmem:[%s1316_s4 + $0x378] sm:$0xff]  ;;  %v534_v35 = vmul.f32 %v1323_v1, %v297_v30 }
  0x9d   : > { %738 = vst [vmem:[%s1335_s20 + $0x270] sm:$0xff] %v502_v34  ;;  %v299_v34 = vld [vmem:[%s1316_s4 + $0x380] sm:$0xff]  ;;  %v535_v37 = vmul.f32 %v1323_v1, %v298_v32 }
  0x9e   : > { %739 = vst [vmem:[%s1335_s20 + $0x278] sm:$0xff] %v503_v36  ;;  %v300_v36 = vld [vmem:[%s1316_s4 + $0x388] sm:$0xff]  ;;  %v536_v39 = vmul.f32 %v1323_v1, %v299_v34 }
  0x9f   : > { %740 = vst [vmem:[%s1335_s20 + $0x280] sm:$0xff] %v504_v38  ;;  %v301_v38 = vld [vmem:[%s1316_s4 + $0x390] sm:$0xff]  ;;  %v537_v41 = vmul.f32 %v1323_v1, %v300_v36 }
  0xa0   : > { %741 = vst [vmem:[%s1335_s20 + $0x288] sm:$0xff] %v505_v40  ;;  %v302_v40 = vld [vmem:[%s1316_s4 + $0x398] sm:$0xff]  ;;  %v538_v43 = vmul.f32 %v1323_v1, %v301_v38 }
  0xa1   : > { %742 = vst [vmem:[%s1335_s20 + $0x290] sm:$0xff] %v506_v42  ;;  %v303_v42 = vld [vmem:[%s1316_s4 + $0x3a0] sm:$0xff]  ;;  %v539_v45 = vmul.f32 %v1323_v1, %v302_v40 }
  0xa2   : > { %743 = vst [vmem:[%s1335_s20 + $0x298] sm:$0xff] %v507_v44  ;;  %v304_v44 = vld [vmem:[%s1316_s4 + $0x3a8] sm:$0xff]  ;;  %v540_v47 = vmul.f32 %v1323_v1, %v303_v42 }
  0xa3   : > { %744 = vst [vmem:[%s1335_s20 + $0x2a0] sm:$0xff] %v508_v46  ;;  %v305_v46 = vld [vmem:[%s1316_s4 + $0x3b0] sm:$0xff]  ;;  %v541_v49 = vmul.f32 %v1323_v1, %v304_v44 }
  0xa4   : > { %745 = vst [vmem:[%s1335_s20 + $0x2a8] sm:$0xff] %v509_v48  ;;  %v306_v48 = vld [vmem:[%s1316_s4 + $0x3b8] sm:$0xff]  ;;  %v542_v51 = vmul.f32 %v1323_v1, %v305_v46 }
  0xa5   : > { %746 = vst [vmem:[%s1335_s20 + $0x2b0] sm:$0xff] %v510_v50  ;;  %v307_v50 = vld [vmem:[%s1316_s4 + $0x3c0] sm:$0xff]  ;;  %v543_v53 = vmul.f32 %v1323_v1, %v306_v48 }
  0xa6   : > { %747 = vst [vmem:[%s1335_s20 + $0x2b8] sm:$0xff] %v511_v52  ;;  %v308_v52 = vld [vmem:[%s1316_s4 + $0x3c8] sm:$0xff]  ;;  %v544_v55 = vmul.f32 %v1323_v1, %v307_v50 }
  0xa7   : > { %748 = vst [vmem:[%s1335_s20 + $0x2c0] sm:$0xff] %v512_v54  ;;  %v309_v54 = vld [vmem:[%s1316_s4 + $0x3d0] sm:$0xff]  ;;  %v545_v57 = vmul.f32 %v1323_v1, %v308_v52 }
  0xa8   : > { %749 = vst [vmem:[%s1335_s20 + $0x2c8] sm:$0xff] %v513_v56  ;;  %v310_v56 = vld [vmem:[%s1316_s4 + $0x3d8] sm:$0xff]  ;;  %v546_v59 = vmul.f32 %v1323_v1, %v309_v54 }
  0xa9   : > { %750 = vst [vmem:[%s1335_s20 + $0x2d0] sm:$0xff] %v514_v58  ;;  %v311_v58 = vld [vmem:[%s1316_s4 + $0x3e0] sm:$0xff]  ;;  %v547_v61 = vmul.f32 %v1323_v1, %v310_v56 }
  0xaa   : > { %751 = vst [vmem:[%s1335_s20 + $0x2d8] sm:$0xff] %v515_v60  ;;  %v312_v60 = vld [vmem:[%s1316_s4 + $0x3e8] sm:$0xff]  ;;  %v548_v63 = vmul.f32 %v1323_v1, %v311_v58 }
  0xab   : > { %752 = vst [vmem:[%s1335_s20 + $0x2e0] sm:$0xff] %v516_v62  ;;  %v313_v62 = vld [vmem:[%s1316_s4 + $0x3f0] sm:$0xff]  ;;  %v549_v2 = vmul.f32 %v1323_v1, %v312_v60 }
  0xac   : > { %753 = vst [vmem:[%s1335_s20 + $0x2e8] sm:$0xff] %v517_v0  ;;  %v314_v0 = vld [vmem:[%s1316_s4 + $0x3f8] sm:$0xff]  ;;  %v550_v4 = vmul.f32 %v1323_v1, %v313_v62 }
  0xad   : > { %754 = vst [vmem:[%s1335_s20 + $0x2f0] sm:$0xff] %v518_v3  ;;  %v315_v3 = vld [vmem:[%s1316_s4 + $0x400] sm:$0xff]  ;;  %v551_v6 = vmul.f32 %v1323_v1, %v314_v0 }
  0xae   : > { %755 = vst [vmem:[%s1335_s20 + $0x2f8] sm:$0xff] %v519_v5  ;;  %v316_v5 = vld [vmem:[%s1316_s4 + $0x408] sm:$0xff]  ;;  %v552_v8 = vmul.f32 %v1323_v1, %v315_v3 }
  0xaf   : > { %756 = vst [vmem:[%s1335_s20 + $0x300] sm:$0xff] %v520_v7  ;;  %v317_v7 = vld [vmem:[%s1316_s4 + $0x410] sm:$0xff]  ;;  %v553_v10 = vmul.f32 %v1323_v1, %v316_v5 }
  0xb0   : > { %757 = vst [vmem:[%s1335_s20 + $0x308] sm:$0xff] %v521_v9  ;;  %v318_v9 = vld [vmem:[%s1316_s4 + $0x418] sm:$0xff]  ;;  %v554_v12 = vmul.f32 %v1323_v1, %v317_v7 }
  0xb1   : > { %758 = vst [vmem:[%s1335_s20 + $0x310] sm:$0xff] %v522_v11  ;;  %v319_v11 = vld [vmem:[%s1316_s4 + $0x420] sm:$0xff]  ;;  %v555_v14 = vmul.f32 %v1323_v1, %v318_v9 }
  0xb2   : > { %759 = vst [vmem:[%s1335_s20 + $0x318] sm:$0xff] %v523_v13  ;;  %v320_v13 = vld [vmem:[%s1316_s4 + $0x428] sm:$0xff]  ;;  %v556_v16 = vmul.f32 %v1323_v1, %v319_v11 }
  0xb3   : > { %760 = vst [vmem:[%s1335_s20 + $0x320] sm:$0xff] %v524_v15  ;;  %v321_v15 = vld [vmem:[%s1316_s4 + $0x430] sm:$0xff]  ;;  %v557_v18 = vmul.f32 %v1323_v1, %v320_v13 }
  0xb4   : > { %761 = vst [vmem:[%s1335_s20 + $0x328] sm:$0xff] %v525_v17  ;;  %v322_v17 = vld [vmem:[%s1316_s4 + $0x438] sm:$0xff]  ;;  %v558_v20 = vmul.f32 %v1323_v1, %v321_v15 }
  0xb5   : > { %762 = vst [vmem:[%s1335_s20 + $0x330] sm:$0xff] %v526_v19  ;;  %v323_v19 = vld [vmem:[%s1316_s4 + $0x440] sm:$0xff]  ;;  %v559_v22 = vmul.f32 %v1323_v1, %v322_v17 }
  0xb6   : > { %763 = vst [vmem:[%s1335_s20 + $0x338] sm:$0xff] %v527_v21  ;;  %v324_v21 = vld [vmem:[%s1316_s4 + $0x448] sm:$0xff]  ;;  %v560_v24 = vmul.f32 %v1323_v1, %v323_v19 }
  0xb7   : > { %764 = vst [vmem:[%s1335_s20 + $0x340] sm:$0xff] %v528_v23  ;;  %v325_v23 = vld [vmem:[%s1316_s4 + $0x450] sm:$0xff]  ;;  %v561_v26 = vmul.f32 %v1323_v1, %v324_v21 }
  0xb8   : > { %765 = vst [vmem:[%s1335_s20 + $0x348] sm:$0xff] %v529_v25  ;;  %v326_v25 = vld [vmem:[%s1316_s4 + $0x458] sm:$0xff]  ;;  %v562_v28 = vmul.f32 %v1323_v1, %v325_v23 }
  0xb9   : > { %766 = vst [vmem:[%s1335_s20 + $0x350] sm:$0xff] %v530_v27  ;;  %v327_v27 = vld [vmem:[%s1316_s4 + $0x460] sm:$0xff]  ;;  %v563_v30 = vmul.f32 %v1323_v1, %v326_v25 }
  0xba   : > { %767 = vst [vmem:[%s1335_s20 + $0x358] sm:$0xff] %v531_v29  ;;  %v328_v29 = vld [vmem:[%s1316_s4 + $0x468] sm:$0xff]  ;;  %v564_v32 = vmul.f32 %v1323_v1, %v327_v27 }
  0xbb   : > { %768 = vst [vmem:[%s1335_s20 + $0x360] sm:$0xff] %v532_v31  ;;  %v329_v31 = vld [vmem:[%s1316_s4 + $0x470] sm:$0xff]  ;;  %v565_v34 = vmul.f32 %v1323_v1, %v328_v29 }
  0xbc   : > { %769 = vst [vmem:[%s1335_s20 + $0x368] sm:$0xff] %v533_v33  ;;  %v330_v33 = vld [vmem:[%s1316_s4 + $0x478] sm:$0xff]  ;;  %v566_v36 = vmul.f32 %v1323_v1, %v329_v31 }
  0xbd   : > { %770 = vst [vmem:[%s1335_s20 + $0x370] sm:$0xff] %v534_v35  ;;  %v331_v35 = vld [vmem:[%s1316_s4 + $0x480] sm:$0xff]  ;;  %v567_v38 = vmul.f32 %v1323_v1, %v330_v33 }
  0xbe   : > { %771 = vst [vmem:[%s1335_s20 + $0x378] sm:$0xff] %v535_v37  ;;  %v332_v37 = vld [vmem:[%s1316_s4 + $0x488] sm:$0xff]  ;;  %v568_v40 = vmul.f32 %v1323_v1, %v331_v35 }
  0xbf   : > { %772 = vst [vmem:[%s1335_s20 + $0x380] sm:$0xff] %v536_v39  ;;  %v333_v39 = vld [vmem:[%s1316_s4 + $0x490] sm:$0xff]  ;;  %v569_v42 = vmul.f32 %v1323_v1, %v332_v37 }
  0xc0   : > { %773 = vst [vmem:[%s1335_s20 + $0x388] sm:$0xff] %v537_v41  ;;  %v334_v41 = vld [vmem:[%s1316_s4 + $0x498] sm:$0xff]  ;;  %v570_v44 = vmul.f32 %v1323_v1, %v333_v39 }
  0xc1   : > { %774 = vst [vmem:[%s1335_s20 + $0x390] sm:$0xff] %v538_v43  ;;  %v335_v43 = vld [vmem:[%s1316_s4 + $0x4a0] sm:$0xff]  ;;  %v571_v46 = vmul.f32 %v1323_v1, %v334_v41 }
  0xc2   : > { %775 = vst [vmem:[%s1335_s20 + $0x398] sm:$0xff] %v539_v45  ;;  %v336_v45 = vld [vmem:[%s1316_s4 + $0x4a8] sm:$0xff]  ;;  %v572_v48 = vmul.f32 %v1323_v1, %v335_v43 }
  0xc3   : > { %776 = vst [vmem:[%s1335_s20 + $0x3a0] sm:$0xff] %v540_v47  ;;  %v337_v47 = vld [vmem:[%s1316_s4 + $0x4b0] sm:$0xff]  ;;  %v573_v50 = vmul.f32 %v1323_v1, %v336_v45 }
  0xc4   : > { %777 = vst [vmem:[%s1335_s20 + $0x3a8] sm:$0xff] %v541_v49  ;;  %v338_v49 = vld [vmem:[%s1316_s4 + $0x4b8] sm:$0xff]  ;;  %v574_v52 = vmul.f32 %v1323_v1, %v337_v47 }
  0xc5   : > { %778 = vst [vmem:[%s1335_s20 + $0x3b0] sm:$0xff] %v542_v51  ;;  %v339_v51 = vld [vmem:[%s1316_s4 + $0x4c0] sm:$0xff]  ;;  %v575_v54 = vmul.f32 %v1323_v1, %v338_v49 }
  0xc6   : > { %779 = vst [vmem:[%s1335_s20 + $0x3b8] sm:$0xff] %v543_v53  ;;  %v340_v53 = vld [vmem:[%s1316_s4 + $0x4c8] sm:$0xff]  ;;  %v576_v56 = vmul.f32 %v1323_v1, %v339_v51 }
  0xc7   : > { %780 = vst [vmem:[%s1335_s20 + $0x3c0] sm:$0xff] %v544_v55  ;;  %v341_v55 = vld [vmem:[%s1316_s4 + $0x4d0] sm:$0xff]  ;;  %v577_v58 = vmul.f32 %v1323_v1, %v340_v53 }
  0xc8   : > { %781 = vst [vmem:[%s1335_s20 + $0x3c8] sm:$0xff] %v545_v57  ;;  %v342_v57 = vld [vmem:[%s1316_s4 + $0x4d8] sm:$0xff]  ;;  %v578_v60 = vmul.f32 %v1323_v1, %v341_v55 }
  0xc9   : > { %782 = vst [vmem:[%s1335_s20 + $0x3d0] sm:$0xff] %v546_v59  ;;  %v343_v59 = vld [vmem:[%s1316_s4 + $0x4e0] sm:$0xff]  ;;  %v579_v62 = vmul.f32 %v1323_v1, %v342_v57 }
  0xca   : > { %783 = vst [vmem:[%s1335_s20 + $0x3d8] sm:$0xff] %v547_v61  ;;  %v344_v61 = vld [vmem:[%s1316_s4 + $0x4e8] sm:$0xff]  ;;  %v580_v0 = vmul.f32 %v1323_v1, %v343_v59 }
  0xcb   : > { %784 = vst [vmem:[%s1335_s20 + $0x3e0] sm:$0xff] %v548_v63  ;;  %v345_v63 = vld [vmem:[%s1316_s4 + $0x4f0] sm:$0xff]  ;;  %v581_v3 = vmul.f32 %v1323_v1, %v344_v61 }
  0xcc   : > { %785 = vst [vmem:[%s1335_s20 + $0x3e8] sm:$0xff] %v549_v2  ;;  %v346_v2 = vld [vmem:[%s1316_s4 + $0x4f8] sm:$0xff]  ;;  %v582_v5 = vmul.f32 %v1323_v1, %v345_v63 }
  0xcd   : > { %786 = vst [vmem:[%s1335_s20 + $0x3f0] sm:$0xff] %v550_v4  ;;  %v347_v4 = vld [vmem:[%s1316_s4 + $0x500] sm:$0xff]  ;;  %v583_v7 = vmul.f32 %v1323_v1, %v346_v2 }
  0xce   : > { %787 = vst [vmem:[%s1335_s20 + $0x3f8] sm:$0xff] %v551_v6  ;;  %v348_v6 = vld [vmem:[%s1316_s4 + $0x508] sm:$0xff]  ;;  %v584_v9 = vmul.f32 %v1323_v1, %v347_v4 }
  0xcf   : > { %788 = vst [vmem:[%s1335_s20 + $0x400] sm:$0xff] %v552_v8  ;;  %v349_v8 = vld [vmem:[%s1316_s4 + $0x510] sm:$0xff]  ;;  %v585_v11 = vmul.f32 %v1323_v1, %v348_v6 }
  0xd0   : > { %789 = vst [vmem:[%s1335_s20 + $0x408] sm:$0xff] %v553_v10  ;;  %v350_v10 = vld [vmem:[%s1316_s4 + $0x518] sm:$0xff]  ;;  %v586_v13 = vmul.f32 %v1323_v1, %v349_v8 }
  0xd1   : > { %790 = vst [vmem:[%s1335_s20 + $0x410] sm:$0xff] %v554_v12  ;;  %v351_v12 = vld [vmem:[%s1316_s4 + $0x520] sm:$0xff]  ;;  %v587_v15 = vmul.f32 %v1323_v1, %v350_v10 }
  0xd2   : > { %791 = vst [vmem:[%s1335_s20 + $0x418] sm:$0xff] %v555_v14  ;;  %v352_v14 = vld [vmem:[%s1316_s4 + $0x528] sm:$0xff]  ;;  %v588_v17 = vmul.f32 %v1323_v1, %v351_v12 }
  0xd3   : > { %792 = vst [vmem:[%s1335_s20 + $0x420] sm:$0xff] %v556_v16  ;;  %v353_v16 = vld [vmem:[%s1316_s4 + $0x530] sm:$0xff]  ;;  %v589_v19 = vmul.f32 %v1323_v1, %v352_v14 }
  0xd4   : > { %793 = vst [vmem:[%s1335_s20 + $0x428] sm:$0xff] %v557_v18  ;;  %v354_v18 = vld [vmem:[%s1316_s4 + $0x538] sm:$0xff]  ;;  %v590_v21 = vmul.f32 %v1323_v1, %v353_v16 }
  0xd5   : > { %794 = vst [vmem:[%s1335_s20 + $0x430] sm:$0xff] %v558_v20  ;;  %v355_v20 = vld [vmem:[%s1316_s4 + $0x540] sm:$0xff]  ;;  %v591_v23 = vmul.f32 %v1323_v1, %v354_v18 }
  0xd6   : > { %795 = vst [vmem:[%s1335_s20 + $0x438] sm:$0xff] %v559_v22  ;;  %v356_v22 = vld [vmem:[%s1316_s4 + $0x548] sm:$0xff]  ;;  %v592_v25 = vmul.f32 %v1323_v1, %v355_v20 }
  0xd7   : > { %796 = vst [vmem:[%s1335_s20 + $0x440] sm:$0xff] %v560_v24  ;;  %v357_v24 = vld [vmem:[%s1316_s4 + $0x550] sm:$0xff]  ;;  %v593_v27 = vmul.f32 %v1323_v1, %v356_v22 }
  0xd8   : > { %797 = vst [vmem:[%s1335_s20 + $0x448] sm:$0xff] %v561_v26  ;;  %v358_v26 = vld [vmem:[%s1316_s4 + $0x558] sm:$0xff]  ;;  %v594_v29 = vmul.f32 %v1323_v1, %v357_v24 }
  0xd9   : > { %798 = vst [vmem:[%s1335_s20 + $0x450] sm:$0xff] %v562_v28  ;;  %v359_v28 = vld [vmem:[%s1316_s4 + $0x560] sm:$0xff]  ;;  %v595_v31 = vmul.f32 %v1323_v1, %v358_v26 }
  0xda   : > { %799 = vst [vmem:[%s1335_s20 + $0x458] sm:$0xff] %v563_v30  ;;  %v360_v30 = vld [vmem:[%s1316_s4 + $0x568] sm:$0xff]  ;;  %v596_v33 = vmul.f32 %v1323_v1, %v359_v28 }
  0xdb   : > { %800 = vst [vmem:[%s1335_s20 + $0x460] sm:$0xff] %v564_v32  ;;  %v361_v32 = vld [vmem:[%s1316_s4 + $0x570] sm:$0xff]  ;;  %v597_v35 = vmul.f32 %v1323_v1, %v360_v30 }
  0xdc   : > { %801 = vst [vmem:[%s1335_s20 + $0x468] sm:$0xff] %v565_v34  ;;  %v362_v34 = vld [vmem:[%s1316_s4 + $0x578] sm:$0xff]  ;;  %v598_v37 = vmul.f32 %v1323_v1, %v361_v32 }
  0xdd   : > { %802 = vst [vmem:[%s1335_s20 + $0x470] sm:$0xff] %v566_v36  ;;  %v363_v36 = vld [vmem:[%s1316_s4 + $0x580] sm:$0xff]  ;;  %v599_v39 = vmul.f32 %v1323_v1, %v362_v34 }
  0xde   : > { %803 = vst [vmem:[%s1335_s20 + $0x478] sm:$0xff] %v567_v38  ;;  %v364_v38 = vld [vmem:[%s1316_s4 + $0x588] sm:$0xff]  ;;  %v600_v41 = vmul.f32 %v1323_v1, %v363_v36 }
  0xdf   : > { %804 = vst [vmem:[%s1335_s20 + $0x480] sm:$0xff] %v568_v40  ;;  %v365_v40 = vld [vmem:[%s1316_s4 + $0x590] sm:$0xff]  ;;  %v601_v43 = vmul.f32 %v1323_v1, %v364_v38 }
  0xe0   : > { %805 = vst [vmem:[%s1335_s20 + $0x488] sm:$0xff] %v569_v42  ;;  %v366_v42 = vld [vmem:[%s1316_s4 + $0x598] sm:$0xff]  ;;  %v602_v45 = vmul.f32 %v1323_v1, %v365_v40 }
  0xe1   : > { %806 = vst [vmem:[%s1335_s20 + $0x490] sm:$0xff] %v570_v44  ;;  %v367_v44 = vld [vmem:[%s1316_s4 + $0x5a0] sm:$0xff]  ;;  %v603_v47 = vmul.f32 %v1323_v1, %v366_v42 }
  0xe2   : > { %807 = vst [vmem:[%s1335_s20 + $0x498] sm:$0xff] %v571_v46  ;;  %v368_v46 = vld [vmem:[%s1316_s4 + $0x5a8] sm:$0xff]  ;;  %v604_v49 = vmul.f32 %v1323_v1, %v367_v44 }
  0xe3   : > { %808 = vst [vmem:[%s1335_s20 + $0x4a0] sm:$0xff] %v572_v48  ;;  %v369_v48 = vld [vmem:[%s1316_s4 + $0x5b0] sm:$0xff]  ;;  %v605_v51 = vmul.f32 %v1323_v1, %v368_v46 }
  0xe4   : > { %809 = vst [vmem:[%s1335_s20 + $0x4a8] sm:$0xff] %v573_v50  ;;  %v370_v50 = vld [vmem:[%s1316_s4 + $0x5b8] sm:$0xff]  ;;  %v606_v53 = vmul.f32 %v1323_v1, %v369_v48 }
  0xe5   : > { %810 = vst [vmem:[%s1335_s20 + $0x4b0] sm:$0xff] %v574_v52  ;;  %v371_v52 = vld [vmem:[%s1316_s4 + $0x5c0] sm:$0xff]  ;;  %v607_v55 = vmul.f32 %v1323_v1, %v370_v50 }
  0xe6   : > { %811 = vst [vmem:[%s1335_s20 + $0x4b8] sm:$0xff] %v575_v54  ;;  %v372_v54 = vld [vmem:[%s1316_s4 + $0x5c8] sm:$0xff]  ;;  %v608_v57 = vmul.f32 %v1323_v1, %v371_v52 }
  0xe7   : > { %812 = vst [vmem:[%s1335_s20 + $0x4c0] sm:$0xff] %v576_v56  ;;  %v373_v56 = vld [vmem:[%s1316_s4 + $0x5d0] sm:$0xff]  ;;  %v609_v59 = vmul.f32 %v1323_v1, %v372_v54 }
  0xe8   : > { %813 = vst [vmem:[%s1335_s20 + $0x4c8] sm:$0xff] %v577_v58  ;;  %v374_v58 = vld [vmem:[%s1316_s4 + $0x5d8] sm:$0xff]  ;;  %v610_v61 = vmul.f32 %v1323_v1, %v373_v56 }
  0xe9   : > { %814 = vst [vmem:[%s1335_s20 + $0x4d0] sm:$0xff] %v578_v60  ;;  %v375_v60 = vld [vmem:[%s1316_s4 + $0x5e0] sm:$0xff]  ;;  %v611_v63 = vmul.f32 %v1323_v1, %v374_v58 }
  0xea   : > { %815 = vst [vmem:[%s1335_s20 + $0x4d8] sm:$0xff] %v579_v62  ;;  %v376_v62 = vld [vmem:[%s1316_s4 + $0x5e8] sm:$0xff]  ;;  %v612_v2 = vmul.f32 %v1323_v1, %v375_v60 }
  0xeb   : > { %816 = vst [vmem:[%s1335_s20 + $0x4e0] sm:$0xff] %v580_v0  ;;  %v377_v0 = vld [vmem:[%s1316_s4 + $0x5f0] sm:$0xff]  ;;  %v613_v4 = vmul.f32 %v1323_v1, %v376_v62 }
  0xec   : > { %817 = vst [vmem:[%s1335_s20 + $0x4e8] sm:$0xff] %v581_v3  ;;  %v378_v3 = vld [vmem:[%s1316_s4 + $0x5f8] sm:$0xff]  ;;  %v614_v6 = vmul.f32 %v1323_v1, %v377_v0 }
  0xed   : > { %818 = vst [vmem:[%s1335_s20 + $0x4f0] sm:$0xff] %v582_v5  ;;  %v379_v5 = vld [vmem:[%s1316_s4 + $0x600] sm:$0xff]  ;;  %v615_v8 = vmul.f32 %v1323_v1, %v378_v3 }
  0xee   : > { %819 = vst [vmem:[%s1335_s20 + $0x4f8] sm:$0xff] %v583_v7  ;;  %v380_v7 = vld [vmem:[%s1316_s4 + $0x608] sm:$0xff]  ;;  %v616_v10 = vmul.f32 %v1323_v1, %v379_v5 }
  0xef   : > { %820 = vst [vmem:[%s1335_s20 + $0x500] sm:$0xff] %v584_v9  ;;  %v381_v9 = vld [vmem:[%s1316_s4 + $0x610] sm:$0xff]  ;;  %v617_v12 = vmul.f32 %v1323_v1, %v380_v7 }
  0xf0   : > { %821 = vst [vmem:[%s1335_s20 + $0x508] sm:$0xff] %v585_v11  ;;  %v382_v11 = vld [vmem:[%s1316_s4 + $0x618] sm:$0xff]  ;;  %v618_v14 = vmul.f32 %v1323_v1, %v381_v9 }
  0xf1   : > { %822 = vst [vmem:[%s1335_s20 + $0x510] sm:$0xff] %v586_v13  ;;  %v383_v13 = vld [vmem:[%s1316_s4 + $0x620] sm:$0xff]  ;;  %v619_v16 = vmul.f32 %v1323_v1, %v382_v11 }
  0xf2   : > { %823 = vst [vmem:[%s1335_s20 + $0x518] sm:$0xff] %v587_v15  ;;  %v384_v15 = vld [vmem:[%s1316_s4 + $0x628] sm:$0xff]  ;;  %v620_v18 = vmul.f32 %v1323_v1, %v383_v13 }
  0xf3   : > { %824 = vst [vmem:[%s1335_s20 + $0x520] sm:$0xff] %v588_v17  ;;  %v385_v17 = vld [vmem:[%s1316_s4 + $0x630] sm:$0xff]  ;;  %v621_v20 = vmul.f32 %v1323_v1, %v384_v15 }
  0xf4   : > { %825 = vst [vmem:[%s1335_s20 + $0x528] sm:$0xff] %v589_v19  ;;  %v386_v19 = vld [vmem:[%s1316_s4 + $0x638] sm:$0xff]  ;;  %v622_v22 = vmul.f32 %v1323_v1, %v385_v17 }
  0xf5   : > { %826 = vst [vmem:[%s1335_s20 + $0x530] sm:$0xff] %v590_v21  ;;  %v387_v21 = vld [vmem:[%s1316_s4 + $0x640] sm:$0xff]  ;;  %v623_v24 = vmul.f32 %v1323_v1, %v386_v19 }
  0xf6   : > { %827 = vst [vmem:[%s1335_s20 + $0x538] sm:$0xff] %v591_v23  ;;  %v388_v23 = vld [vmem:[%s1316_s4 + $0x648] sm:$0xff]  ;;  %v624_v26 = vmul.f32 %v1323_v1, %v387_v21 }
  0xf7   : > { %828 = vst [vmem:[%s1335_s20 + $0x540] sm:$0xff] %v592_v25  ;;  %v389_v25 = vld [vmem:[%s1316_s4 + $0x650] sm:$0xff]  ;;  %v625_v28 = vmul.f32 %v1323_v1, %v388_v23 }
  0xf8   : > { %829 = vst [vmem:[%s1335_s20 + $0x548] sm:$0xff] %v593_v27  ;;  %v390_v27 = vld [vmem:[%s1316_s4 + $0x658] sm:$0xff]  ;;  %v626_v30 = vmul.f32 %v1323_v1, %v389_v25 }
  0xf9   : > { %830 = vst [vmem:[%s1335_s20 + $0x550] sm:$0xff] %v594_v29  ;;  %v391_v29 = vld [vmem:[%s1316_s4 + $0x660] sm:$0xff]  ;;  %v627_v32 = vmul.f32 %v1323_v1, %v390_v27 }
  0xfa   : > { %831 = vst [vmem:[%s1335_s20 + $0x558] sm:$0xff] %v595_v31  ;;  %v392_v31 = vld [vmem:[%s1316_s4 + $0x668] sm:$0xff]  ;;  %v628_v34 = vmul.f32 %v1323_v1, %v391_v29 }
  0xfb   : > { %832 = vst [vmem:[%s1335_s20 + $0x560] sm:$0xff] %v596_v33  ;;  %v393_v33 = vld [vmem:[%s1316_s4 + $0x670] sm:$0xff]  ;;  %v629_v36 = vmul.f32 %v1323_v1, %v392_v31 }
  0xfc   : > { %833 = vst [vmem:[%s1335_s20 + $0x568] sm:$0xff] %v597_v35  ;;  %v394_v35 = vld [vmem:[%s1316_s4 + $0x678] sm:$0xff]  ;;  %v630_v38 = vmul.f32 %v1323_v1, %v393_v33 }
  0xfd   : > { %834 = vst [vmem:[%s1335_s20 + $0x570] sm:$0xff] %v598_v37  ;;  %v395_v37 = vld [vmem:[%s1316_s4 + $0x680] sm:$0xff]  ;;  %v631_v40 = vmul.f32 %v1323_v1, %v394_v35 }
  0xfe   : > { %835 = vst [vmem:[%s1335_s20 + $0x578] sm:$0xff] %v599_v39  ;;  %v396_v39 = vld [vmem:[%s1316_s4 + $0x688] sm:$0xff]  ;;  %v632_v42 = vmul.f32 %v1323_v1, %v395_v37 }
  0xff   : > { %836 = vst [vmem:[%s1335_s20 + $0x580] sm:$0xff] %v600_v41  ;;  %v397_v41 = vld [vmem:[%s1316_s4 + $0x690] sm:$0xff]  ;;  %v633_v44 = vmul.f32 %v1323_v1, %v396_v39 }
 0x100   : > { %837 = vst [vmem:[%s1335_s20 + $0x588] sm:$0xff] %v601_v43  ;;  %v398_v43 = vld [vmem:[%s1316_s4 + $0x698] sm:$0xff]  ;;  %v634_v46 = vmul.f32 %v1323_v1, %v397_v41 }
 0x101   : > { %838 = vst [vmem:[%s1335_s20 + $0x590] sm:$0xff] %v602_v45  ;;  %v399_v45 = vld [vmem:[%s1316_s4 + $0x6a0] sm:$0xff]  ;;  %v635_v48 = vmul.f32 %v1323_v1, %v398_v43 }
 0x102   : > { %839 = vst [vmem:[%s1335_s20 + $0x598] sm:$0xff] %v603_v47  ;;  %v400_v47 = vld [vmem:[%s1316_s4 + $0x6a8] sm:$0xff]  ;;  %v636_v50 = vmul.f32 %v1323_v1, %v399_v45 }
 0x103   : > { %840 = vst [vmem:[%s1335_s20 + $0x5a0] sm:$0xff] %v604_v49  ;;  %v401_v49 = vld [vmem:[%s1316_s4 + $0x6b0] sm:$0xff]  ;;  %v637_v52 = vmul.f32 %v1323_v1, %v400_v47 }
 0x104   : > { %841 = vst [vmem:[%s1335_s20 + $0x5a8] sm:$0xff] %v605_v51  ;;  %v402_v51 = vld [vmem:[%s1316_s4 + $0x6b8] sm:$0xff]  ;;  %v638_v54 = vmul.f32 %v1323_v1, %v401_v49 }
 0x105   : > { %842 = vst [vmem:[%s1335_s20 + $0x5b0] sm:$0xff] %v606_v53  ;;  %v403_v53 = vld [vmem:[%s1316_s4 + $0x6c0] sm:$0xff]  ;;  %v639_v56 = vmul.f32 %v1323_v1, %v402_v51 }
 0x106   : > { %843 = vst [vmem:[%s1335_s20 + $0x5b8] sm:$0xff] %v607_v55  ;;  %v404_v55 = vld [vmem:[%s1316_s4 + $0x6c8] sm:$0xff]  ;;  %v640_v58 = vmul.f32 %v1323_v1, %v403_v53 }
 0x107   : > { %844 = vst [vmem:[%s1335_s20 + $0x5c0] sm:$0xff] %v608_v57  ;;  %v405_v57 = vld [vmem:[%s1316_s4 + $0x6d0] sm:$0xff]  ;;  %v641_v60 = vmul.f32 %v1323_v1, %v404_v55 }
 0x108   : > { %845 = vst [vmem:[%s1335_s20 + $0x5c8] sm:$0xff] %v609_v59  ;;  %v406_v59 = vld [vmem:[%s1316_s4 + $0x6d8] sm:$0xff]  ;;  %v642_v62 = vmul.f32 %v1323_v1, %v405_v57 }
 0x109   : > { %846 = vst [vmem:[%s1335_s20 + $0x5d0] sm:$0xff] %v610_v61  ;;  %v407_v61 = vld [vmem:[%s1316_s4 + $0x6e0] sm:$0xff]  ;;  %v643_v0 = vmul.f32 %v1323_v1, %v406_v59 }
 0x10a   : > { %847 = vst [vmem:[%s1335_s20 + $0x5d8] sm:$0xff] %v611_v63  ;;  %v408_v63 = vld [vmem:[%s1316_s4 + $0x6e8] sm:$0xff]  ;;  %v644_v3 = vmul.f32 %v1323_v1, %v407_v61 }
 0x10b   : > { %848 = vst [vmem:[%s1335_s20 + $0x5e0] sm:$0xff] %v612_v2  ;;  %v409_v2 = vld [vmem:[%s1316_s4 + $0x6f0] sm:$0xff]  ;;  %v645_v5 = vmul.f32 %v1323_v1, %v408_v63 }
 0x10c   : > { %849 = vst [vmem:[%s1335_s20 + $0x5e8] sm:$0xff] %v613_v4  ;;  %v410_v4 = vld [vmem:[%s1316_s4 + $0x6f8] sm:$0xff]  ;;  %v646_v7 = vmul.f32 %v1323_v1, %v409_v2 }
 0x10d   : > { %850 = vst [vmem:[%s1335_s20 + $0x5f0] sm:$0xff] %v614_v6  ;;  %v411_v6 = vld [vmem:[%s1316_s4 + $0x700] sm:$0xff]  ;;  %v647_v9 = vmul.f32 %v1323_v1, %v410_v4 }
 0x10e   : > { %851 = vst [vmem:[%s1335_s20 + $0x5f8] sm:$0xff] %v615_v8  ;;  %v412_v8 = vld [vmem:[%s1316_s4 + $0x708] sm:$0xff]  ;;  %v648_v11 = vmul.f32 %v1323_v1, %v411_v6 }
 0x10f   : > { %852 = vst [vmem:[%s1335_s20 + $0x600] sm:$0xff] %v616_v10  ;;  %v413_v10 = vld [vmem:[%s1316_s4 + $0x710] sm:$0xff]  ;;  %v649_v13 = vmul.f32 %v1323_v1, %v412_v8 }
 0x110   : > { %853 = vst [vmem:[%s1335_s20 + $0x608] sm:$0xff] %v617_v12  ;;  %v414_v12 = vld [vmem:[%s1316_s4 + $0x718] sm:$0xff]  ;;  %v650_v15 = vmul.f32 %v1323_v1, %v413_v10 }
 0x111   : > { %854 = vst [vmem:[%s1335_s20 + $0x610] sm:$0xff] %v618_v14  ;;  %v415_v14 = vld [vmem:[%s1316_s4 + $0x720] sm:$0xff]  ;;  %v651_v17 = vmul.f32 %v1323_v1, %v414_v12 }
 0x112   : > { %855 = vst [vmem:[%s1335_s20 + $0x618] sm:$0xff] %v619_v16  ;;  %v416_v16 = vld [vmem:[%s1316_s4 + $0x728] sm:$0xff]  ;;  %v652_v19 = vmul.f32 %v1323_v1, %v415_v14 }
 0x113   : > { %856 = vst [vmem:[%s1335_s20 + $0x620] sm:$0xff] %v620_v18  ;;  %v417_v18 = vld [vmem:[%s1316_s4 + $0x730] sm:$0xff]  ;;  %v653_v21 = vmul.f32 %v1323_v1, %v416_v16 }
 0x114   : > { %857 = vst [vmem:[%s1335_s20 + $0x628] sm:$0xff] %v621_v20  ;;  %v418_v20 = vld [vmem:[%s1316_s4 + $0x738] sm:$0xff]  ;;  %v654_v23 = vmul.f32 %v1323_v1, %v417_v18 }
 0x115   : > { %858 = vst [vmem:[%s1335_s20 + $0x630] sm:$0xff] %v622_v22  ;;  %v419_v22 = vld [vmem:[%s1316_s4 + $0x740] sm:$0xff]  ;;  %v655_v25 = vmul.f32 %v1323_v1, %v418_v20 }
 0x116   : > { %859 = vst [vmem:[%s1335_s20 + $0x638] sm:$0xff] %v623_v24  ;;  %v420_v24 = vld [vmem:[%s1316_s4 + $0x748] sm:$0xff]  ;;  %v656_v27 = vmul.f32 %v1323_v1, %v419_v22 }
 0x117   : > { %860 = vst [vmem:[%s1335_s20 + $0x640] sm:$0xff] %v624_v26  ;;  %v421_v26 = vld [vmem:[%s1316_s4 + $0x750] sm:$0xff]  ;;  %v657_v29 = vmul.f32 %v1323_v1, %v420_v24 }
 0x118   : > { %861 = vst [vmem:[%s1335_s20 + $0x648] sm:$0xff] %v625_v28  ;;  %v422_v28 = vld [vmem:[%s1316_s4 + $0x758] sm:$0xff] }
 0x119   : > { %862 = vst [vmem:[%s1335_s20 + $0x650] sm:$0xff] %v626_v30  ;;  %v658_v30 = vmul.f32 %v1323_v1, %v421_v26  ;;  %v659_v31 = vmul.f32 %v1323_v1, %v422_v28 }
 0x11a   : > { %863 = vst [vmem:[%s1335_s20 + $0x658] sm:$0xff] %v627_v32 }
 0x11b   : > { %864 = vst [vmem:[%s1335_s20 + $0x660] sm:$0xff] %v628_v34 }
 0x11c   : > { %865 = vst [vmem:[%s1335_s20 + $0x668] sm:$0xff] %v629_v36 }
 0x11d   : > { %866 = vst [vmem:[%s1335_s20 + $0x670] sm:$0xff] %v630_v38 }
 0x11e   : > { %867 = vst [vmem:[%s1335_s20 + $0x678] sm:$0xff] %v631_v40 }
 0x11f   : > { %868 = vst [vmem:[%s1335_s20 + $0x680] sm:$0xff] %v632_v42 }
 0x120   : > { %869 = vst [vmem:[%s1335_s20 + $0x688] sm:$0xff] %v633_v44 }
 0x121   : > { %870 = vst [vmem:[%s1335_s20 + $0x690] sm:$0xff] %v634_v46 }
 0x122   : > { %871 = vst [vmem:[%s1335_s20 + $0x698] sm:$0xff] %v635_v48 }
 0x123   : > { %872 = vst [vmem:[%s1335_s20 + $0x6a0] sm:$0xff] %v636_v50 }
 0x124   : > { %873 = vst [vmem:[%s1335_s20 + $0x6a8] sm:$0xff] %v637_v52 }
 0x125   : > { %874 = vst [vmem:[%s1335_s20 + $0x6b0] sm:$0xff] %v638_v54 }
 0x126   : > { %875 = vst [vmem:[%s1335_s20 + $0x6b8] sm:$0xff] %v639_v56 }
 0x127   : > { %876 = vst [vmem:[%s1335_s20 + $0x6c0] sm:$0xff] %v640_v58 }
 0x128   : > { %877 = vst [vmem:[%s1335_s20 + $0x6c8] sm:$0xff] %v641_v60 }
 0x129   : > { %878 = vst [vmem:[%s1335_s20 + $0x6d0] sm:$0xff] %v642_v62 }
 0x12a   : > { %879 = vst [vmem:[%s1335_s20 + $0x6d8] sm:$0xff] %v643_v0 }
 0x12b   : > { %880 = vst [vmem:[%s1335_s20 + $0x6e0] sm:$0xff] %v644_v3 }
 0x12c   : > { %881 = vst [vmem:[%s1335_s20 + $0x6e8] sm:$0xff] %v645_v5 }
 0x12d   : > { %882 = vst [vmem:[%s1335_s20 + $0x6f0] sm:$0xff] %v646_v7 }
 0x12e   : > { %883 = vst [vmem:[%s1335_s20 + $0x6f8] sm:$0xff] %v647_v9 }
 0x12f   : > { %884 = vst [vmem:[%s1335_s20 + $0x700] sm:$0xff] %v648_v11 }
 0x130   : > { %885 = vst [vmem:[%s1335_s20 + $0x708] sm:$0xff] %v649_v13 }
 0x131   : > { %886 = vst [vmem:[%s1335_s20 + $0x710] sm:$0xff] %v650_v15 }
 0x132   : > { %887 = vst [vmem:[%s1335_s20 + $0x718] sm:$0xff] %v651_v17 }
 0x133   : > { %888 = vst [vmem:[%s1335_s20 + $0x720] sm:$0xff] %v652_v19 }
 0x134   : > { %889 = vst [vmem:[%s1335_s20 + $0x728] sm:$0xff] %v653_v21 }
 0x135   : > { %890 = vst [vmem:[%s1335_s20 + $0x730] sm:$0xff] %v654_v23 }
 0x136   : > { %891 = vst [vmem:[%s1335_s20 + $0x738] sm:$0xff] %v655_v25  ;;  %903 = sbr.rel (!%p1253_p9) target bundleno = 346 (0x15a), region = 36 }
 0x137   : > { %892 = vst [vmem:[%s1335_s20 + $0x740] sm:$0xff] %v656_v27 }
 0x138   : > { %893 = vst [vmem:[%s1335_s20 + $0x748] sm:$0xff] %v657_v29 }
 0x139   : > { %894 = vst [vmem:[%s1335_s20 + $0x750] sm:$0xff] %v658_v30 }
 0x13a   : > { %895 = vst [vmem:[%s1335_s20 + $0x758] sm:$0xff] %v659_v31 }
 0x13b   : > { %s2114_s7 = smov (!%p906_p6, %s905_s7), 118 }
 0x13c   : > { %s1017_s15 = sshll.u32 %s2114_s7, 4 }
 0x13d   : > { %s910_s25 = ssub.s32 1888, %s1017_s15 }
 0x13e   : > { %s911_s27 = sshll.u32 %s910_s25, 4 }
 0x13f   : > { %912 = vsyncadd %s897_s30, %s911_s27  ;;  %p2043_p11 = scmp.ne.s32.totalorder %s1017_s15, 0  ;;  %s1021_s28 = smul.u32 1888, %s1230_s0 }
 0x140   : > { %s918_s29 = sshll.u32 %s1335_s20, 4  ;;  %s1011_s3 = sshll.u32 %s2114_s7, 8  ;;  %s2053_s29 = int_to_ptr.vmem [resolvable:$true] %s918_s29 }
 0x141   : > { %s916_s9 = scalar_lea.hbm %s2099_s2, %s1021_s28  ;;  %s1106_s17 = sshra.s32 %s2053_s29, 4  ;;  %s1107_s17 = int_to_ptr.vmem [resolvable:$true] %s1106_s17 }
 0x142   : > { %s920_s10 = sshll.u32 %s916_s9, 4  ;;  %s1108_s23 = sshrl.u32 %s1011_s3, 4  ;;  %s2055_s10 = int_to_ptr.hbm [resolvable:$true] %s920_s10 }
 0x143   : > { %s1113_s24 = scalar_lea.vmem %s1107_s17, %s1108_s23  ;;  %s1188_s0 = smov [#allocation6]  }
 0x144   : > { %p1114_p9 = scmp.ne.s32.totalorder %s1107_s17, %s1113_s24  ;;  %s1117_s4 = scalar_lea.vmem %s1188_s0, 3776 }
 0x145   : > { %p1119_p7 = scmp.lt.s32.totalorder %s1117_s4, %s1113_s24 }
 0x146   : > { %p1115_p13 = pnand %p1114_p9, %p2043_p11 }
 0x148   : > { %p1116_p5 = pneg %p1115_p13 }
 0x14a   : > { %p1121_p8 = pnand %p1119_p7, %p1116_p5 }
 0x14c   : > { %1124 = shalt.err (!%p1121_p8)
}
 0x14d   : > { %s1125_s26 = sshra.s32 %s2055_s10, 4  ;;  %s1136_s25 = scalar_lea.hbm %s2099_s2, 3760  ;;  %s1126_s26 = int_to_ptr.hbm [resolvable:$true] %s1125_s26 }
 0x14e   : > { %s1132_s20 = scalar_lea.hbm %s1126_s26, %s1108_s23  ;;  %p1137_p2 = scmp.lt.s32.totalorder %s1126_s26, %s2099_s2 }
 0x14f   : > { %p1133_p12 = scmp.ne.s32.totalorder %s1126_s26, %s1132_s20  ;;  %p1138_p3 = scmp.lt.s32.totalorder %s1136_s25, %s1132_s20 }
 0x151   : > { %p1134_p0 = pnand %p1133_p12, %p2043_p11  ;;  %p1139_p4 = por %p1138_p3, %p1137_p2 }
 0x153   : > { %p1135_p1 = pneg %p1134_p0 }
 0x155   : > { %p1140_p6 = pnand %p1139_p4, %p1135_p1 }
 0x157   : > { %1143 = shalt.err (!%p1140_p6)
}
 0x158   : > { %s1189_s5 = smov 256   ;;  %s1190_s8 = smov 16  }
 0x159   : > { %926 = dma.vmem_to_hbm [thread:$0]  (%p2043_p11), %s2053_s29, %s1011_s3, %s2055_s10, %s897_s30, %s1189_s5, %s1189_s5, %s1190_s8  }
 0x15a PF: > { %s935_s9 = sand.u32 1, %s1171_s11   ;;  %p2106_p9 = scmp.ge.s32.totalorder %s1183_s14, 2 }
 0x15b   : > { %s936_s17 = scalar_lea.sflag [#allocation5], %s935_s9 }
 0x15c   : > { %p1027_p13 = pnand %p2106_p9, %p1257_p10 }
 0x15e   : > { %p1028_p5 = pneg %p1027_p13 }
 0x160   : > { %1166 = dma.done.wait (%p1028_p5), %s936_s17, 30208  }
 0x161   : > { %1168 = vsyncadd (%p1028_p5), %s936_s17, 4294937088  ;;  %p16_p7 = scmp.ge.s32.totalorder %s1234_s16, 4   ;;  %s2107_s11 = smov %s1175_s12 }
 0x162   : > { %s2108_s12 = smov %s1179_s13  ;;  %s2109_s13 = smov %s1246_s19 }
 0x163   : > { %s2110_s14 = smov %s1234_s16  ;;  %18 = sbr.rel (!%p16_p7) target bundleno = 7 (0x7), region = 73 }
 0x168   :  { %942 = vsyncpa [#allocation4], 1 }
 0x169   :  { %944 = vsyncpa [#allocation4 + $0x1], 1 }
 0x16a   :  { %945 = vsyncpa [#allocation5], 1 }
 0x16b   :  { %947 = vsyncpa [#allocation5 + $0x1], 1 }

</bundles_post_ra>
